<compile_context>
chip_gen: v6e
topology: v6e:2x2x1
jax: 0.10.0
libtpu: 0.0.40
codegen_flags: <defaults>
</compile_context>

<pallas_src>
import math

import jax
import jax.numpy as jnp
from jax.experimental import pallas as pl
from jax.experimental.pallas import tpu as pltpu


def _copy_kernel(x_ref, o_ref):
    # Identity copy of the current (tile_r, C) tile.
    o_ref[...] = x_ref[...]


_MAX_LANES = 8192              # cap on slab width (lanes), multiple of 128
_TILE_BYTES = 4 * 1024 * 1024  # ~4 MiB/tile -> 2x double-buffered in+out fits
                               # comfortably in v7x's 32 MiB scoped VMEM


def _pick_slab(total, itemsize):
    """Lane-dense (R, C, tile_R) factorization of `total` with C % 128 == 0."""
    if total % 128 != 0:
        return None
    best = None
    max_k = min(total // 128, _MAX_LANES // 128)
    for k in range(max_k, 0, -1):
        c = 128 * k
        if total % c != 0:
            continue
        r = total // c
        if best is None:
            best = (r, c)          # widest legal C
        if r >= 8:                 # prefer full sublane occupancy too
            best = (r, c)
            break
    r, c = best
    # Rows per tile: bounded by the VMEM budget, multiple of 8 (or full extent).
    rows_budget = max(8, _TILE_BYTES // (c * itemsize))
    tile_r = max(8, (rows_budget // 8) * 8)
    if tile_r >= r:
        tile_r = r                 # full extent -> always layout-legal
    return r, c, tile_r


def nn_reshape(x, *args):
    """Pallas implementation of NnReshape(*args).forward(x)."""
    b = x.shape[0]
    out_shape = (b,) + tuple(args)
    total = math.prod(x.shape)
    itemsize = jnp.dtype(x.dtype).itemsize

    slab = _pick_slab(total, itemsize)
    if slab is None:
        # Element count not a multiple of 128: a row-major reshape is
        # metadata-only anyway, so skip the copy kernel entirely.
        return jnp.reshape(x, out_shape)

    r, c, tile_r = slab

    # Row-major flatten to a lane-dense slab (metadata only).
    x_flat = jnp.reshape(x, (r, c))

    y_flat = pl.pallas_call(
        _copy_kernel,
        out_shape=jax.ShapeDtypeStruct((r, c), x.dtype),
        grid=(pl.cdiv(r, tile_r),),
        in_specs=[pl.BlockSpec((tile_r, c), lambda i: (i, 0))],
        out_specs=pl.BlockSpec((tile_r, c), lambda i: (i, 0)),
        # Output reuses the input HBM buffer: the "copy" moves ~0 extra bytes.
        input_output_aliases={0: 0},
        compiler_params=pltpu.CompilerParams(
            dimension_semantics=("parallel",),
        ),
        cost_estimate=pl.CostEstimate(
            flops=0,
            transcendentals=0,
            bytes_accessed=2 * total * itemsize,
        ),
    )(x_flat)

    # Apply the requested view shape (metadata only) — matches torch .view.
    return jnp.reshape(y_flat, out_shape)


if __name__ == "__main__":
    key = jax.random.PRNGKey(0)
    # Small NCHW input consistent with a conv-style feature map.
    x = jax.random.normal(key, (2, 4, 16, 16), dtype=jnp.float32)

    # NnReshape(64, 16): view (2, 4, 16, 16) -> (2, 64, 16)
    args = (64, 16)
    out = jax.block_until_ready(jax.jit(lambda t: nn_reshape(t, *args))(x))

    # Reference: plain row-major reshape (== torch .view semantics).
    ref = jnp.reshape(x, (x.shape[0],) + args)

    assert out.shape == (2, 64, 16), out.shape
    assert out.dtype == x.dtype
    assert bool(jnp.array_equal(out, ref))

    print("KERNEL_OK")
</pallas_src>

<mosaic_0001>
module attributes {stable_mosaic.version = 11 : i64} {
  func.func @_copy_kernel(%arg0: i32, %arg1: memref<8x256xf32, #tpu.memory_space<vmem>>, %arg2: memref<8x256xf32, #tpu.memory_space<vmem>>) attributes {dimension_semantics = [#tpu.dimension_semantics<parallel>], iteration_bounds = array<i64: 1>, scalar_prefetch = 0 : i64, scratch_operands = 0 : i64, tpu.core_type = #tpu.core_type<tc>, window_params = [{transform_indices = @transform_0, window_bounds = array<i64: 8, 256>}, {transform_indices = @transform_1, window_bounds = array<i64: 8, 256>}]} {
    %c0 = arith.constant 0 : index
    %c0_0 = arith.constant 0 : index
    %0 = vector.load %arg1[%c0, %c0_0] : memref<8x256xf32, #tpu.memory_space<vmem>>, vector<8x256xf32>
    %c0_1 = arith.constant 0 : index
    %c0_2 = arith.constant 0 : index
    %1 = vector.load %arg2[%c0_1, %c0_2] : memref<8x256xf32, #tpu.memory_space<vmem>>, vector<8x256xf32>
    tpu.vector_store %arg2[%c0_1, %c0_2], %0 {strides = array<i32>} : memref<8x256xf32, #tpu.memory_space<vmem>>, vector<8x256xf32>,
    return
  }
  func.func @transform_0(%arg0: i32) -> (i32, i32) {
    %c0_i32 = arith.constant 0 : i32
    %c0_i32_0 = arith.constant 0 : i32
    return %arg0, %c0_i32 : i32, i32
  }
  func.func @transform_1(%arg0: i32) -> (i32, i32) {
    %c0_i32 = arith.constant 0 : i32
    %c0_i32_0 = arith.constant 0 : i32
    return %arg0, %c0_i32 : i32, i32
  }
}

</mosaic_0001>

<bundles_post_ra>
// kernel: _lambda_.1
= control target key start
LH: loop header
LB: loop body
LE: loop exit
PB: predicated region body
PF: predicated region fallthrough
CT: control target
= control target key end

     0   :  { %s38_s0 = inlined_call_operand.vmem [shape: f32[8,256], index: 0, kind: input, shape index: {}, may-alias: {0,1}]   ;;  %s39_s1 = inlined_call_operand.vmem [shape: f32[8,256], index: 1, kind: output, shape index: {}, may-alias: {0,1}]  }
   0x1   :  { %v8_v0 = vld [vmem:[%s38_s0] sm:$0xff]  ;;  %v9_v1 = vld [vmem:[%s38_s0 + $0x8] sm:$0xff] }
   0x2   :  { %10 = vst [vmem:[%s39_s1] sm:$0xff] %v8_v0  ;;  %11 = vst [vmem:[%s39_s1 + $0x8] sm:$0xff] %v9_v1 }

</bundles_post_ra>
